<compile_context>
chip_gen: v7x
topology: tpu7x:2x2x1
jax: 0.10.0
libtpu: 0.0.40
codegen_flags: <defaults>
</compile_context>

<pallas_src>
import jax
import jax.numpy as jnp
from jax.experimental import pallas as pl
from jax.experimental.pallas import tpu as pltpu

IN_F = 28 * 28   # 784
HID = 128
OUT = 10
OUT_PAD = 128    # lane-dense padded logits width (in-register compute only)
OUT_STORE = 16   # narrow HBM writeback width (>= OUT, equals out array's last dim)
NEG = -1e30      # padded-logit bias value (never wins max, exp() -> 0)


def mlp_kernel(x_ref, w1_ref, b1_ref, w2_ref, b2_ref, o_ref):
    # x_ref:  (TB, 784) f32 (cast to bf16 in-kernel)   w1_ref: (784, 128) bf16
    # b1_ref: (1, 128) f32
    # w2_ref: (128, 128) bf16 (cols >= 10 are zero)
    # b2_ref: (1, 128) f32  (cols >= 10 are -1e30)
    # o_ref:  (TB, 16) f32  (only cols < 10 meaningful)
    b1 = b1_ref[...]          # hoisted bias reads
    b2 = b2_ref[...]

    # layer1: cast x to bf16 (hides under DMA), bf16 MXU matmul, f32 accumulate
    x_bf16 = x_ref[...].astype(jnp.bfloat16)
    h = jnp.dot(x_bf16, w1_ref[...], preferred_element_type=jnp.float32) + b1
    h = jnp.maximum(h, 0.0)

    # layer2 on the padded 128-wide logits: bf16 MXU, f32 accumulate
    logits = jnp.dot(h.astype(jnp.bfloat16), w2_ref[...],
                     preferred_element_type=jnp.float32) + b2

    # numerically stable log_softmax over all 128 lanes; padded lanes sit at ~-1e30
    # so they never win the max and contribute exp() == 0 to the denominator.
    m = jnp.max(logits, axis=-1, keepdims=True)
    shifted = logits - m
    lse = jnp.log(jnp.sum(jnp.exp(shifted), axis=-1, keepdims=True))
    logp = shifted - lse

    # narrow lane-range store: only the first 16 lanes go back to HBM
    o_ref[...] = logp[:, :OUT_STORE]


def _round_up(n, m):
    return ((n + m - 1) // m) * m


def mlp_forward(x_nchw, w1_bf16, b1_f32, w2_pad_bf16, b2_pad_f32, tb_max=1024):
    """x_nchw: (B, 1, 28, 28) f32. Returns (B, 10) f32 log-probs."""
    B = x_nchw.shape[0]
    x2d = x_nchw.reshape(B, IN_F)   # free row-major reshape; f32 stays at rest in HBM

    # Tile selection:
    #  * split B into near-equal tiles (avoids the ragged round_up(B, tb_max) blow-up)
    #  * for B >= 512 force >= 2 tiles so v7x megacore ("parallel") has work for both TCs
    #  * TB a multiple of 16; with tb_max=1024 and f32 x the double-buffered x tile is
    #    ~6.4 MiB, well under every chip's scoped-VMEM default (incl. v5e's 16 MiB).
    n_tiles = max(pl.cdiv(B, tb_max), 2 if B >= 512 else 1)
    TB = min(_round_up(pl.cdiv(B, n_tiles), 16), _round_up(tb_max, 16))
    Bp = _round_up(B, TB)
    if Bp != B:
        x2d = jnp.pad(x2d, ((0, Bp - B), (0, 0)))  # zero rows -> finite log-probs, sliced off

    cost = pl.CostEstimate(
        flops=2 * Bp * (IN_F * HID + HID * OUT_PAD),
        transcendentals=Bp * (OUT_PAD + 1),
        bytes_accessed=(Bp * IN_F * 4                     # x read (f32)
                        + Bp * OUT_STORE * 4              # out write (f32, 16 lanes)
                        + IN_F * HID * 2 + HID * OUT_PAD * 2   # bf16 weights
                        + (HID + OUT_PAD) * 4),           # f32 biases
    )

    out = pl.pallas_call(
        mlp_kernel,
        out_shape=jax.ShapeDtypeStruct((Bp, OUT_STORE), jnp.float32),
        grid=(Bp // TB,),
        in_specs=[
            pl.BlockSpec((TB, IN_F), lambda i: (i, 0)),       # x: tiled over batch (streamed)
            pl.BlockSpec((IN_F, HID), lambda i: (0, 0)),      # w1: resident
            pl.BlockSpec((1, HID), lambda i: (0, 0)),         # b1: resident
            pl.BlockSpec((HID, OUT_PAD), lambda i: (0, 0)),   # w2 (padded): resident
            pl.BlockSpec((1, OUT_PAD), lambda i: (0, 0)),     # b2 (padded): resident
        ],
        out_specs=pl.BlockSpec((TB, OUT_STORE), lambda i: (i, 0)),
        compiler_params=pltpu.CompilerParams(
            dimension_semantics=("parallel",),   # megacore sharding on v7x; no-op on v5e/v6e
        ),
        cost_estimate=cost,
    )(x2d, w1_bf16, b1_f32, w2_pad_bf16, b2_pad_f32)

    return out[:B, :OUT]


def init_params(key):
    # Deterministic init mimicking nn.Linear's uniform(-1/sqrt(fan_in), 1/sqrt(fan_in)),
    # stored as (in, out) == torch weight transposed. Returned in f32 (reference dtype).
    k1, k2, k3, k4 = jax.random.split(key, 4)
    lim1 = 1.0 / jnp.sqrt(float(IN_F))
    lim2 = 1.0 / jnp.sqrt(float(HID))
    w1 = jax.random.uniform(k1, (IN_F, HID), jnp.float32, -lim1, lim1)
    b1 = jax.random.uniform(k2, (1, HID), jnp.float32, -lim1, lim1)
    w2 = jax.random.uniform(k3, (HID, OUT), jnp.float32, -lim2, lim2)
    b2 = jax.random.uniform(k4, (1, OUT), jnp.float32, -lim2, lim2)
    return w1, b1, w2, b2


def prepare_params(w1, b1, w2, b2):
    """Convert f32 reference params into the kernel's bf16 / lane-padded layout (done once)."""
    w1_bf16 = w1.astype(jnp.bfloat16)
    b1_f32 = b1.astype(jnp.float32)
    w2_pad = jnp.zeros((HID, OUT_PAD), jnp.float32).at[:, :OUT].set(w2).astype(jnp.bfloat16)
    b2_pad = jnp.full((1, OUT_PAD), NEG, jnp.float32).at[:, :OUT].set(b2)
    return w1_bf16, b1_f32, w2_pad, b2_pad


if __name__ == "__main__":
    key = jax.random.PRNGKey(0)
    kx, kp = jax.random.split(key)

    B = 8
    x = jax.random.normal(kx, (B, 1, 28, 28), jnp.float32)  # NCHW, like MNIST batches
    w1, b1, w2, b2 = init_params(kp)
    w1_bf16, b1_f32, w2_pad, b2_pad = prepare_params(w1, b1, w2, b2)

    out = mlp_forward(x, w1_bf16, b1_f32, w2_pad, b2_pad)
    out = jax.block_until_ready(out)
    assert out.shape == (B, OUT)

    x2d = x.reshape(B, IN_F)

    # Reference 1: matched precision (bf16 operands, f32 accumulation) -> tight check.
    h_m = jnp.maximum(
        jnp.dot(x2d.astype(jnp.bfloat16), w1_bf16, preferred_element_type=jnp.float32) + b1, 0.0)
    logits_m = jnp.dot(h_m.astype(jnp.bfloat16), w2.astype(jnp.bfloat16),
                       preferred_element_type=jnp.float32) + b2
    ref_matched = jax.nn.log_softmax(logits_m, axis=1)
    assert jnp.allclose(out, ref_matched, atol=1e-3, rtol=1e-3)

    # Reference 2: full f32 torch semantics -> loose check (bf16 MXU feed).
    ref_f32 = jax.nn.log_softmax(jnp.maximum(x2d @ w1 + b1, 0.0) @ w2 + b2, axis=1)
    assert jnp.allclose(out, ref_f32, atol=5e-2, rtol=5e-2)

    print("KERNEL_OK")
</pallas_src>

<mosaic_0001>
module attributes {stable_mosaic.version = 11 : i64} {
  func.func @mlp_kernel(%arg0: i32, %arg1: memref<16x784xf32, #tpu.memory_space<vmem>>, %arg2: memref<784x128xbf16, #tpu.memory_space<vmem>>, %arg3: memref<1x128xf32, #tpu.memory_space<vmem>>, %arg4: memref<128x128xbf16, #tpu.memory_space<vmem>>, %arg5: memref<1x128xf32, #tpu.memory_space<vmem>>, %arg6: memref<16x16xf32, #tpu.memory_space<vmem>>) attributes {dimension_semantics = [#tpu.dimension_semantics<parallel>], iteration_bounds = array<i64: 1>, scalar_prefetch = 0 : i64, scratch_operands = 0 : i64, tpu.core_type = #tpu.core_type<tc>, window_params = [{transform_indices = @transform_0, window_bounds = array<i64: 16, 784>}, {pipeline_mode = #tpu.pipeline_mode<synchronous>, transform_indices = @transform_1, window_bounds = array<i64: 784, 128>}, {pipeline_mode = #tpu.pipeline_mode<synchronous>, transform_indices = @transform_2, window_bounds = array<i64: 1, 128>}, {pipeline_mode = #tpu.pipeline_mode<synchronous>, transform_indices = @transform_3, window_bounds = array<i64: 128, 128>}, {pipeline_mode = #tpu.pipeline_mode<synchronous>, transform_indices = @transform_4, window_bounds = array<i64: 1, 128>}, {transform_indices = @transform_5, window_bounds = array<i64: 16, 16>}]} {
    %c0 = arith.constant 0 : index
    %c0_0 = arith.constant 0 : index
    %0 = vector.load %arg3[%c0, %c0_0] : memref<1x128xf32, #tpu.memory_space<vmem>>, vector<1x128xf32>
    %c0_1 = arith.constant 0 : index
    %c0_2 = arith.constant 0 : index
    %1 = vector.load %arg5[%c0_1, %c0_2] : memref<1x128xf32, #tpu.memory_space<vmem>>, vector<1x128xf32>
    %c0_3 = arith.constant 0 : index
    %c0_4 = arith.constant 0 : index
    %2 = vector.load %arg1[%c0_3, %c0_4] : memref<16x784xf32, #tpu.memory_space<vmem>>, vector<16x784xf32>
    %3 = arith.truncf %2 : vector<16x784xf32> to vector<16x784xbf16>
    %c0_5 = arith.constant 0 : index
    %c0_6 = arith.constant 0 : index
    %4 = vector.load %arg2[%c0_5, %c0_6] : memref<784x128xbf16, #tpu.memory_space<vmem>>, vector<784x128xbf16>
    %cst = arith.constant dense<0.000000e+00> : vector<16x128xf32>
    %5 = tpu.matmul %3, %4, %cst {dimension_numbers = #tpu.dot_dimension_numbers<[1], [0], [0], [1], [0, 0, 1, 1], [], []>} : vector<16x784xbf16>, vector<784x128xbf16>, vector<16x128xf32> -> vector<16x128xf32>
    %6 = vector.broadcast %0 : vector<1x128xf32> to vector<16x128xf32>
    %7 = arith.addf %5, %6 : vector<16x128xf32>
    %cst_7 = arith.constant 0.000000e+00 : f32
    %8 = vector.broadcast %cst_7 : f32 to vector<16x128xf32>
    %9 = arith.maximumf %7, %8 : vector<16x128xf32>
    %10 = arith.truncf %9 : vector<16x128xf32> to vector<16x128xbf16>
    %c0_8 = arith.constant 0 : index
    %c0_9 = arith.constant 0 : index
    %11 = vector.load %arg4[%c0_8, %c0_9] : memref<128x128xbf16, #tpu.memory_space<vmem>>, vector<128x128xbf16>
    %cst_10 = arith.constant dense<0.000000e+00> : vector<16x128xf32>
    %12 = tpu.matmul %10, %11, %cst_10 {dimension_numbers = #tpu.dot_dimension_numbers<[1], [0], [0], [1], [0, 0, 1, 1], [], []>} : vector<16x128xbf16>, vector<128x128xbf16>, vector<16x128xf32> -> vector<16x128xf32>
    %13 = vector.broadcast %1 : vector<1x128xf32> to vector<16x128xf32>
    %14 = arith.addf %12, %13 : vector<16x128xf32>
    %cst_11 = arith.constant dense<0xFF800000> : vector<16xf32>
    %15 = vector.multi_reduction <maximumf>, %14, %cst_11 [1] : vector<16x128xf32> to vector<16xf32>
    %16 = vector.shape_cast %15 : vector<16xf32> to vector<16x1xf32>
    %17 = vector.broadcast %16 : vector<16x1xf32> to vector<16x128xf32>
    %18 = arith.subf %14, %17 : vector<16x128xf32>
    %19 = math.exp %18 : vector<16x128xf32>
    %cst_12 = arith.constant dense<0.000000e+00> : vector<16xf32>
    %20 = vector.multi_reduction <add>, %19, %cst_12 [1] : vector<16x128xf32> to vector<16xf32>
    %21 = vector.shape_cast %20 : vector<16xf32> to vector<16x1xf32>
    %22 = math.log %21 : vector<16x1xf32>
    %23 = vector.broadcast %22 : vector<16x1xf32> to vector<16x128xf32>
    %24 = arith.subf %18, %23 : vector<16x128xf32>
    %25 = vector.extract_strided_slice %24 {offsets = [0, 0], sizes = [16, 16], strides = [1, 1]} : vector<16x128xf32> to vector<16x16xf32>
    %c0_13 = arith.constant 0 : index
    %c0_14 = arith.constant 0 : index
    %26 = vector.load %arg6[%c0_13, %c0_14] : memref<16x16xf32, #tpu.memory_space<vmem>>, vector<16x16xf32>
    tpu.vector_store %arg6[%c0_13, %c0_14], %25 {strides = array<i32>} : memref<16x16xf32, #tpu.memory_space<vmem>>, vector<16x16xf32>,
    return
  }
  func.func @transform_0(%arg0: i32) -> (i32, i32) {
    %c0_i32 = arith.constant 0 : i32
    %c0_i32_0 = arith.constant 0 : i32
    return %arg0, %c0_i32 : i32, i32
  }
  func.func @transform_1(%arg0: i32) -> (i32, i32) {
    %c0_i32 = arith.constant 0 : i32
    %c0_i32_0 = arith.constant 0 : i32
    %c0_i32_1 = arith.constant 0 : i32
    return %c0_i32, %c0_i32_0 : i32, i32
  }
  func.func @transform_2(%arg0: i32) -> (i32, i32) {
    %c0_i32 = arith.constant 0 : i32
    %c0_i32_0 = arith.constant 0 : i32
    %c0_i32_1 = arith.constant 0 : i32
    return %c0_i32, %c0_i32_0 : i32, i32
  }
  func.func @transform_3(%arg0: i32) -> (i32, i32) {
    %c0_i32 = arith.constant 0 : i32
    %c0_i32_0 = arith.constant 0 : i32
    %c0_i32_1 = arith.constant 0 : i32
    return %c0_i32, %c0_i32_0 : i32, i32
  }
  func.func @transform_4(%arg0: i32) -> (i32, i32) {
    %c0_i32 = arith.constant 0 : i32
    %c0_i32_0 = arith.constant 0 : i32
    %c0_i32_1 = arith.constant 0 : i32
    return %c0_i32, %c0_i32_0 : i32, i32
  }
  func.func @transform_5(%arg0: i32) -> (i32, i32) {
    %c0_i32 = arith.constant 0 : i32
    %c0_i32_0 = arith.constant 0 : i32
    return %arg0, %c0_i32 : i32, i32
  }
}

</mosaic_0001>

<bundles_post_ra>
// kernel: tpu_custom_call.1
= control target key start
LH: loop header
LB: loop body
LE: loop exit
PB: predicated region body
PF: predicated region fallthrough
CT: control target
= control target key end

     0   :  { %10 = vsyncpa [#allocation3], 0  ;;  %s1258_s0 = inlined_call_operand.hbm [shape: f32[16,784], index: 0, kind: input, shape index: {}]   ;;  %s1259_s1 = inlined_call_operand.hbm [shape: bf16[784,128], index: 1, kind: input, shape index: {}]   ;;  %s1260_s2 = inlined_call_operand.vmem [shape: f32[1,128], index: 2, kind: input, shape index: {}]   ;;  %s1261_s3 = inlined_call_operand.hbm [shape: bf16[128,128], index: 3, kind: input, shape index: {}]   ;;  %s1262_s4 = inlined_call_operand.vmem [shape: f32[1,128], index: 4, kind: input, shape index: {}]   ;;  %s1263_s5 = inlined_call_operand.hbm [shape: f32[16,16], index: 5, kind: output, shape index: {}]  }
   0x1   :  { %11 = vsyncpa [#allocation6], 0 }
   0x2   :  { %12 = vsyncpa [#allocation4], 0  ;;  %s1140_s18 = smov [#allocation5]   ;;  %s1046_s22 = scalar_lea.hbm %s1259_s1, 6272 }
   0x3   :  { %s30_s19 = sshll.u32 %s1140_s18, 4  ;;  %p1047_p0 = scmp.ne.s32.totalorder %s1259_s1, %s1046_s22  ;;  %s31_s19 = int_to_ptr.vmem [resolvable:$true] %s30_s19 }
   0x4   :  { %p1050_p1 = scmp.lt.u32.totalorder %s1046_s22, %s1259_s1 }
   0x6   :  { %p1052_p2 = pnand %p1050_p1, %p1047_p0 }
   0x8   :  { %1055 = shalt.err (!%p1052_p2)
}
   0x9   :  { %s1056_s27 = scalar_lea.vmem %s31_s19, 6272  ;;  %p1061_p4 = scmp.lt.s32.totalorder %s31_s19, %s31_s19 }
   0xa   :  { %p1057_p3 = scmp.ne.s32.totalorder %s31_s19, %s1056_s27  ;;  %p1062_p5 = scmp.lt.s32.totalorder %s1056_s27, %s1056_s27 }
   0xc   :  { %p1063_p6 = por %p1062_p5, %p1061_p4 }
   0xe   :  { %p1064_p7 = pnand %p1063_p6, %p1057_p3 }
  0x10   :  { %1067 = shalt.err (!%p1064_p7)
}
  0x11   :  { %s1141_s28 = smov 64   ;;  %s1142_s29 = smov 4  }
  0x12   :  { %36 = dma.hbm_to_vmem [thread:$0]  %s1259_s1, 6272, %s31_s19, [#allocation6], %s1141_s28, %s1141_s28, %s1142_s29  }
  0x13   :  { %s1143_s7 = smov [#allocation2]   ;;  %s1068_s11 = scalar_lea.hbm %s1258_s0, 1792 }
  0x14   :  { %s18_s8 = sshll.u32 %s1143_s7, 4  ;;  %p1069_p8 = scmp.ne.s32.totalorder %s1258_s0, %s1068_s11  ;;  %s19_s8 = int_to_ptr.vmem [resolvable:$true] %s18_s8 }
  0x15   :  { %p1072_p9 = scmp.lt.u32.totalorder %s1068_s11, %s1258_s0 }
  0x17   :  { %p1074_p10 = pnand %p1072_p9, %p1069_p8 }
  0x19   :  { %1077 = shalt.err (!%p1074_p10)
}
  0x1a   :  { %s1078_s16 = scalar_lea.vmem %s19_s8, 1792  ;;  %p1083_p12 = scmp.lt.s32.totalorder %s19_s8, %s19_s8 }
  0x1b   :  { %p1079_p11 = scmp.ne.s32.totalorder %s19_s8, %s1078_s16  ;;  %p1084_p13 = scmp.lt.s32.totalorder %s1078_s16, %s1078_s16 }
  0x1d   :  { %p1085_p0 = por %p1084_p13, %p1083_p12 }
  0x1f   :  { %p1086_p1 = pnand %p1085_p0, %p1079_p11 }
  0x21   :  { %1089 = shalt.err (!%p1086_p1)
}
  0x22   :  { %s1144_s1 = smov 896   ;;  %s1145_s17 = smov 56  }
  0x23   :  { %24 = dma.hbm_to_vmem [thread:$0]  %s1258_s0, 1792, %s19_s8, [#allocation3], %s1144_s1, %s1144_s1, %s1145_s17  }
  0x24   :  { %s1146_s20 = smov [#allocation7]   ;;  %s1090_s24 = scalar_lea.hbm %s1261_s3, 1024 }
  0x25   :  { %s44_s21 = sshll.u32 %s1146_s20, 4  ;;  %p1091_p2 = scmp.ne.s32.totalorder %s1261_s3, %s1090_s24  ;;  %s45_s21 = int_to_ptr.vmem [resolvable:$true] %s44_s21 }
  0x26   :  { %p1094_p3 = scmp.lt.u32.totalorder %s1090_s24, %s1261_s3 }
  0x28   :  { %p1096_p4 = pnand %p1094_p3, %p1091_p2 }
  0x2a   :  { %1099 = shalt.err (!%p1096_p4)
}
  0x2b   :  { %s1100_s6 = scalar_lea.vmem %s45_s21, 1024  ;;  %p1105_p6 = scmp.lt.s32.totalorder %s45_s21, %s45_s21 }
  0x2c   :  { %p1101_p5 = scmp.ne.s32.totalorder %s45_s21, %s1100_s6  ;;  %p1106_p7 = scmp.lt.s32.totalorder %s1100_s6, %s1100_s6 }
  0x2e   :  { %p1107_p8 = por %p1106_p7, %p1105_p6 }
  0x30   :  { %p1108_p9 = pnand %p1107_p8, %p1101_p5 }
  0x32   :  { %1111 = shalt.err (!%p1108_p9)
}
  0x33   :  { %50 = dma.hbm_to_vmem [thread:$0]  %s1261_s3, 1024, %s45_s21, [#allocation6], %s1141_s28, %s1141_s28, %s1142_s29  }
  0x34   :  { %1134 = dma.done.wait [#allocation3], 1792  }
  0x35   :  { %1135 = vsyncadd [#allocation3], 4294965504 }
  0x36   :  { %1136 = dma.done.wait [#allocation6], 7296  }
  0x37   :  { %1137 = vsyncadd [#allocation6], 4294960000  ;;  %v981_v0 = vld [vmem:[#allocation5 + $0x40] sm:$0xff]   ;;  %v985_v4 = vld [vmem:[#allocation5 + $0x48] sm:$0xff]   ;;  %v1147_v43 = vmov 0.0   ;;  %vm1148_vm0 = vmmov 0  }
  0x38   :  { %v982_v1 = vld [vmem:[#allocation5] sm:$0xff]   ;;  %866 = vmatprep.subr.bf16.mxu0 %v981_v0  ;;  %v986_v5 = vld [vmem:[#allocation5 + $0x8] sm:$0xff]   ;;  %v989_v8 = vld [vmem:[#allocation5 + $0x50] sm:$0xff]   ;;  %vm484_vm1 = vcmask 130048  }
  0x39   :  { %v983_v2 = vld [vmem:[#allocation5 + $0xc0] sm:$0xff]   ;;  %867 = vmatpush3.bf16.msra.mxu0 %v982_v1  ;;  %v987_v6 = vld [vmem:[#allocation5 + $0xc8] sm:$0xff]   ;;  %v990_v9 = vld [vmem:[#allocation5 + $0x10] sm:$0xff]  }
  0x3a   :  { %v984_v3 = vld [vmem:[#allocation5 + $0x80] sm:$0xff]   ;;  %888 = vmatprep.subr.bf16.mxu1 %v983_v2  ;;  %868 = vmatprep.subr.bf16.mxu0 %v985_v4  ;;  %v988_v7 = vld [vmem:[#allocation5 + $0x88] sm:$0xff]   ;;  %v991_v10 = vld [vmem:[#allocation5 + $0xd0] sm:$0xff]  }
  0x3b   :  { %889 = vmatpush3.bf16.msra.mxu1 %v984_v3  ;;  %v992_v11 = vld [vmem:[#allocation5 + $0x90] sm:$0xff]   ;;  %v993_v12 = vld [vmem:[#allocation5 + $0x58] sm:$0xff]   ;;  %v997_v16 = vld [vmem:[#allocation5 + $0x60] sm:$0xff]  }
  0x3c   :  { %890 = vmatprep.subr.bf16.mxu1 %v987_v6  ;;  %v994_v13 = vld [vmem:[#allocation5 + $0x18] sm:$0xff]   ;;  %v998_v17 = vld [vmem:[#allocation5 + $0x20] sm:$0xff]   ;;  %v1001_v20 = vld [vmem:[#allocation5 + $0x68] sm:$0xff]  }
  0x3d   :  { %869 = vmatpush3.bf16.msra.mxu0 %v986_v5  ;;  %v995_v14 = vld [vmem:[#allocation5 + $0xd8] sm:$0xff]   ;;  %v999_v18 = vld [vmem:[#allocation5 + $0xe0] sm:$0xff]   ;;  %v1002_v21 = vld [vmem:[#allocation5 + $0x28] sm:$0xff]  }
  0x3e   :  { %870 = vmatprep.subr.bf16.mxu0 %v989_v8  ;;  %v996_v15 = vld [vmem:[#allocation5 + $0x98] sm:$0xff]   ;;  %v1000_v19 = vld [vmem:[#allocation5 + $0xa0] sm:$0xff]   ;;  %v1003_v22 = vld [vmem:[#allocation5 + $0xe8] sm:$0xff]  }
  0x3f   :  { %891 = vmatpush3.bf16.msra.mxu1 %v988_v7  ;;  %v1004_v23 = vld [vmem:[#allocation5 + $0xa8] sm:$0xff]   ;;  %v1005_v24 = vld [vmem:[#allocation5 + $0x70] sm:$0xff]   ;;  %v1009_v28 = vld [vmem:[#allocation5 + $0x78] sm:$0xff]  }
  0x40   :  { %892 = vmatprep.subr.bf16.mxu1 %v991_v10  ;;  %v1006_v25 = vld [vmem:[#allocation5 + $0x30] sm:$0xff]   ;;  %v1010_v29 = vld [vmem:[#allocation5 + $0x38] sm:$0xff]   ;;  %v72_v36 = vld [vmem:[#allocation2 + $0x38] sm:$0xff] }
  0x41   :  { %871 = vmatpush3.bf16.msra.mxu0 %v990_v9  ;;  %v1007_v26 = vld [vmem:[#allocation5 + $0xf0] sm:$0xff]   ;;  %v1011_v30 = vld [vmem:[#allocation5 + $0xf8] sm:$0xff]   ;;  %v1013_v38 = vld [vmem:[#allocation5 + $0x140] sm:$0xff]  }
  0x42   :  { %872 = vmatprep.subr.bf16.mxu0 %v993_v12  ;;  %v1008_v27 = vld [vmem:[#allocation5 + $0xb0] sm:$0xff]   ;;  %v66_v31 = vld [vmem:[#allocation2 + $0x8] sm:$0xff]  ;;  %v68_v39 = vld [vmem:[#allocation2 + $0x18] sm:$0xff] }
  0x43   :  { %893 = vmatpush3.bf16.msra.mxu1 %v992_v11  ;;  %v73_v32 = vld [vmem:[#allocation2 + $0x40] sm:$0xff]  ;;  %v1012_v34 = vld [vmem:[#allocation5 + $0xb8] sm:$0xff]   ;;  %v75_v40 = vld [vmem:[#allocation2 + $0x50] sm:$0xff] }
  0x44   :  { %894 = vmatprep.subr.bf16.mxu1 %v995_v14  ;;  %v80_v33 = vpack.c.bf16 %v73_v32, %v66_v31  ;;  %v65_v35 = vld [vmem:[#allocation2] sm:$0xff]  ;;  %v82_v41 = vpack.c.bf16 %v75_v40, %v68_v39  ;;  %v1014_v42 = vld [vmem:[#allocation5 + $0x100] sm:$0xff]   ;;  %v74_v45 = vld [vmem:[#allocation2 + $0x48] sm:$0xff] }
  0x45   :  { %873 = vmatpush3.bf16.msra.mxu0 %v994_v13  ;;  %v79_v37 = vpack.c.bf16 %v72_v36, %v65_v35  ;;  %v67_v44 = vld [vmem:[#allocation2 + $0x10] sm:$0xff]  ;;  %v1015_v47 = vld [vmem:[#allocation5 + $0x148] sm:$0xff]   ;;  %v1017_v49 = vld [vmem:[#allocation5 + $0x150] sm:$0xff]  }
  0x46   :  { %874 = vmatprep.subr.bf16.mxu0 %v997_v16  ;;  %520 = vmatprep.mubr.bf16.mxu0 %v80_v33  ;;  %v81_v46 = vpack.c.bf16 %v74_v45, %v67_v44  ;;  %v1016_v48 = vld [vmem:[#allocation5 + $0x108] sm:$0xff]   ;;  %v1018_v50 = vld [vmem:[#allocation5 + $0x110] sm:$0xff]   ;;  %v1019_v51 = vld [vmem:[#allocation5 + $0x158] sm:$0xff]  }
  0x47   :  { %895 = vmatpush3.bf16.msra.mxu1 %v996_v15  ;;  %561 = vmatprep.mubr.bf16.mxu1 %v82_v41  ;;  %v1020_v52 = vld [vmem:[#allocation5 + $0x118] sm:$0xff]   ;;  %v1021_v53 = vld [vmem:[#allocation5 + $0x160] sm:$0xff]   ;;  %v1023_v55 = vld [vmem:[#allocation5 + $0x168] sm:$0xff]  }
  0x48   :  { %896 = vmatprep.subr.bf16.mxu1 %v999_v18  ;;  %v1022_v54 = vld [vmem:[#allocation5 + $0x120] sm:$0xff]   ;;  %v70_v57 = vld [vmem:[#allocation2 + $0x28] sm:$0xff]  ;;  %v1024_v58 = vld [vmem:[#allocation5 + $0x128] sm:$0xff]  }
  0x49   :  { %875 = vmatpush3.bf16.msra.mxu0 %v998_v17  ;;  %v1029_v56 = vld [vmem:[#allocation5 + $0x180] sm:$0xff]   ;;  %v1025_v59 = vld [vmem:[#allocation5 + $0x170] sm:$0xff]   ;;  %v78_v63 = vld [vmem:[#allocation2 + $0x68] sm:$0xff] }
  0x4a   :  { %876 = vmatprep.subr.bf16.mxu0 %v1001_v20  ;;  %v77_v60 = vld [vmem:[#allocation2 + $0x60] sm:$0xff]  ;;  %v71_v62 = vld [vmem:[#allocation2 + $0x30] sm:$0xff]  ;;  %v1027_v2 = vld [vmem:[#allocation5 + $0x178] sm:$0xff]  }
  0x4b   :  { %897 = vmatpush3.bf16.msra.mxu1 %v1000_v19  ;;  %v84_v61 = vpack.c.bf16 %v77_v60, %v70_v57  ;;  %v85_v0 = vpack.c.bf16 %v78_v63, %v71_v62  ;;  %v1026_v1 = vld [vmem:[#allocation5 + $0x130] sm:$0xff]   ;;  %v1028_v3 = vld [vmem:[#allocation5 + $0x138] sm:$0xff]   ;;  %v76_v5 = vld [vmem:[#allocation2 + $0x58] sm:$0xff] }
  0x4c   :  { %898 = vmatprep.subr.bf16.mxu1 %v1003_v22  ;;  %v69_v4 = vld [vmem:[#allocation2 + $0x20] sm:$0xff]  ;;  %v1030_v7 = vld [vmem:[#allocation7] sm:$0xff]   ;;  %v1032_v9 = vld [vmem:[#allocation7 + $0x10] sm:$0xff]  }
  0x4d   :  { %877 = vmatpush3.bf16.msra.mxu0 %v1002_v21  ;;  %v83_v6 = vpack.c.bf16 %v76_v5, %v69_v4  ;;  %v1031_v8 = vld [vmem:[#allocation7 + $0x8] sm:$0xff]   ;;  %v1033_v10 = vld [vmem:[#allocation7 + $0x18] sm:$0xff]   ;;  %v1034_v11 = vld [vmem:[#allocation7 + $0x20] sm:$0xff]  }
  0x4e   :  { %878 = vmatprep.subr.bf16.mxu0 %v1005_v24  ;;  %v1035_v12 = vld [vmem:[#allocation7 + $0x28] sm:$0xff]   ;;  %v1036_v13 = vld [vmem:[#allocation7 + $0x30] sm:$0xff]   ;;  %v1037_v14 = vld [vmem:[#allocation7 + $0x38] sm:$0xff]  }
  0x4f   :  { %899 = vmatpush3.bf16.msra.mxu1 %v1004_v23  ;;  %v806_v16 = vld [vmem:[%s1260_s2] ss:$0 sm:$0xff] }
  0x50   :  { %900 = vmatprep.subr.bf16.mxu1 %v1007_v26 }
  0x51   :  { %879 = vmatpush3.bf16.msra.mxu0 %v1006_v25 }
  0x52   :  { %880 = vmatprep.subr.bf16.mxu0 %v1009_v28 }
  0x53   :  { %901 = vmatpush3.bf16.msra.mxu1 %v1008_v27 }
  0x54   :  { %902 = vmatprep.subr.bf16.mxu1 %v1011_v30 }
  0x55   :  { %881 = vmatpush3.bf16.msra.mxu0 %v1010_v29 }
  0x56   :  { %910 = vmatprep.subr.bf16.mxu0 %v1013_v38 }
  0x57   :  { %903 = vmatpush3.bf16.msra.mxu1 %v1012_v34 }
  0x58   :  { %943 = vmatprep.subr.bf16.mxu1 %v1147_v43  ;;  %521 = vmatmul.mubr.bf16.vlgmr.msra.gmra.mrb[0].mxu0 %v79_v37 }
  0x59   :  { %911 = vmatpush3.bf16.msra.mxu0 %v1014_v42  ;;  %602 = vmatprep.mubr.bf16.mxu0 %v84_v61 }
  0x5a   :  { %562 = vmatmul.mubr.bf16.vlgmr.msra.gmra.mrb[0].mxu1 %v81_v46  ;;  %912 = vmatprep.subr.bf16.mxu0 %v1015_v47 }
  0x5b   :  { %945 = vmatprep.mubr.msk.bf16.mxu1 %vm1148_vm0, %v1147_v43  ;;  %944 = vmatpush3.bf16.msra.mxu1 %v1029_v56 }
  0x5c   :  { %949 = vmatprep.subr.bf16.mxu1 %v1147_v43 }
  0x5d   :  { %913 = vmatpush3.bf16.msra.mxu0 %v1016_v48 }
  0x5e   :  { %914 = vmatprep.subr.bf16.mxu0 %v1017_v49  ;;  %v857_v49 = vld [vmem:[%s1262_s4] ss:$0 sm:$0xff]  ;;  %s1149_s4 = smov [#allocation8]  }
  0x5f   :  { %s793_s8 = sshll.u32 %s1149_s4, 4  ;;  %s794_s8 = int_to_ptr.vmem [resolvable:$true] %s793_s8 }
  0x60   :  { %s1112_s9 = scalar_lea.vmem %s794_s8, 256  ;;  %p1117_p11 = scmp.lt.s32.totalorder %s794_s8, %s794_s8 }
  0x61   :  { %915 = vmatpush3.bf16.msra.mxu0 %v1018_v50  ;;  %p1113_p10 = scmp.ne.s32.totalorder %s794_s8, %s1112_s9  ;;  %p1118_p12 = scmp.lt.s32.totalorder %s1112_s9, %s1112_s9 }
  0x62   :  { %916 = vmatprep.subr.bf16.mxu0 %v1019_v51  ;;  %946 = vmatmul.mubr.msk.bf16.vlgmr.msra.gmra.mrb[4].mxu1 %vm484_vm1, %v85_v0 }
  0x63   :  { %965 = vmatprep.mubr.msk.bf16.mxu1 %vm1148_vm0, %v1147_v43  ;;  %950 = vmatpush3.bf16.msra.mxu1 %v1030_v7  ;;  %p1119_p13 = por %p1118_p12, %p1117_p11 }
  0x64   :  { %951 = vmatprep.subr.bf16.mxu1 %v1147_v43 }
  0x65   :  { %917 = vmatpush3.bf16.msra.mxu0 %v1020_v52  ;;  %p1120_p0 = pnand %p1119_p13, %p1113_p10 }
  0x66   :  { %918 = vmatprep.subr.bf16.mxu0 %v1021_v53 }
  0x67   :  { %952 = vmatpush3.bf16.msra.mxu1 %v1031_v8 }
  0x68   :  { %953 = vmatprep.subr.bf16.mxu1 %v1147_v43 }
  0x69   :  { %919 = vmatpush3.bf16.msra.mxu0 %v1022_v54 }
  0x6a   :  { %920 = vmatprep.subr.bf16.mxu0 %v1023_v55 }
  0x6b   :  { %954 = vmatpush3.bf16.msra.mxu1 %v1032_v9 }
  0x6c   :  { %955 = vmatprep.subr.bf16.mxu1 %v1147_v43 }
  0x6d   :  { %921 = vmatpush3.bf16.msra.mxu0 %v1024_v58 }
  0x6e   :  { %922 = vmatprep.subr.bf16.mxu0 %v1025_v59 }
  0x6f   :  { %956 = vmatpush3.bf16.msra.mxu1 %v1033_v10 }
  0x70   :  { %957 = vmatprep.subr.bf16.mxu1 %v1147_v43 }
  0x71   :  { %923 = vmatpush3.bf16.msra.mxu0 %v1026_v1 }
  0x72   :  { %924 = vmatprep.subr.bf16.mxu0 %v1027_v2 }
  0x73   :  { %958 = vmatpush3.bf16.msra.mxu1 %v1034_v11 }
  0x74   :  { %959 = vmatprep.subr.bf16.mxu1 %v1147_v43 }
  0x75   :  { %925 = vmatpush3.bf16.msra.mxu0 %v1028_v3 }
  0x77   :  { %960 = vmatpush3.bf16.msra.mxu1 %v1035_v12 }
  0x78   :  { %603 = vmatmul.mubr.bf16.vlgmr.msra.gmra.mrb[4].mxu0 %v83_v6  ;;  %961 = vmatprep.subr.bf16.mxu1 %v1147_v43 }
  0x7b   :  { %962 = vmatpush3.bf16.msra.mxu1 %v1036_v13 }
  0x7c   :  { %963 = vmatprep.subr.bf16.mxu1 %v1147_v43 }
  0x7f   :  { %964 = vmatpush3.bf16.msra.mxu1 %v1037_v14 }
 0x12b   :  { %v882_v15 = vpop.f32.mrb[0].mxu0 }
 0x12c   :  { %v883_v17 = vpop.f32.mrb[1].mxu0 }
 0x12d   :  { %v884_v18 = vadd.f32 %v883_v17, %v882_v15  ;;  %v885_v19 = vpop.f32.mrb[2].mxu0  ;;  %v904_v20 = vpop.f32.mrb[0].mxu1 }
 0x12e   :  { %v886_v21 = vpop.f32.mrb[3].mxu0  ;;  %v905_v24 = vpop.f32.mrb[1].mxu1 }
 0x12f   :  { %v523_v22 = vadd.f32 %v884_v18, %v806_v16  ;;  %v887_v23 = vadd.f32 %v886_v21, %v885_v19  ;;  %v906_v25 = vadd.f32 %v905_v24, %v904_v20  ;;  %v907_v26 = vpop.f32.mrb[2].mxu1 }
 0x130   :  { %v908_v28 = vpop.f32.mrb[3].mxu1 }
 0x131   :  { %v526_v27 = vadd.f32 %v887_v23, %v806_v16  ;;  %v564_v29 = vadd.f32 %v906_v25, %v523_v22  ;;  %v909_v30 = vadd.f32 %v908_v28, %v907_v26 }
 0x133   :  { %v567_v31 = vadd.f32 %v909_v30, %v526_v27 }
 0x135   :  { %v645_v32 = vpop.f32.mrb[4].mxu1 }
 0x136   :  { %v947_v33 = vpop.f32.mrb[5].mxu1 }
 0x137   :  { %v648_v34 = vpop.f32.mrb[6].mxu1 }
 0x138   :  { %v948_v35 = vpop.f32.mrb[7].mxu1 }
 0x14b   :  { %v926_v36 = vpop.f32.mrb[4].mxu0 }
 0x14c   :  { %v927_v37 = vpop.f32.mrb[5].mxu0 }
 0x14d   :  { %v928_v38 = vadd.f32 %v927_v37, %v926_v36  ;;  %v929_v39 = vpop.f32.mrb[6].mxu0 }
 0x14e   :  { %v930_v40 = vpop.f32.mrb[7].mxu0 }
 0x14f   :  { %v605_v41 = vadd.f32 %v928_v38, %v564_v29  ;;  %v931_v42 = vadd.f32 %v930_v40, %v929_v39 }
 0x151   :  { %v646_v43 = vadd.f32 %v645_v32, %v605_v41  ;;  %v608_v44 = vadd.f32 %v931_v42, %v567_v31 }
 0x153   :  { %v649_v45 = vadd.f32 %v648_v34, %v608_v44  ;;  %v652_v46 = vmax.f32 %v646_v43, 0.0 }
 0x155   :  { %v653_v47 = vmax.f32 %v649_v45, 0.0 }
 0x157   :  { %v654_v48 = vpack.c.bf16 %v653_v47, %v652_v46 }
 0x159   :  { %966 = vmatmul.mubr.bf16.vlgmr.msra.gmra.mrb[8].mxu1 %v654_v48 }
 0x22c   :  { %v759_v50 = vpop.f32.mrb[8].mxu1 }
 0x22d   :  { %v760_v51 = vadd.f32 %v857_v49, %v759_v50  ;;  %v967_v52 = vpop.f32.mrb[9].mxu1 }
 0x22e   :  { %v762_v53 = vpop.f32.mrb[10].mxu1 }
 0x22f   :  { %766 = vmax.xlane.f32.xlu0 %v760_v51  ;;  %v968_v54 = vpop.f32.mrb[11].mxu1  ;;  %v763_v55 = vadd.f32 %v857_v49, %v762_v53 }
 0x233   :  { %768 = vmax.xlane.f32.xlu0 %v763_v55 }
 0x2bc   :  { %v767_v56 = vpop.xlane.xlu0 %766 }
 0x2bd   :  { %v770_v57 = vsub.f32 %v760_v51, %v767_v56 }
 0x2bf   :  { %v772_v58 = vmul.f32 1.442695, %v770_v57 }
 0x2c0   :  { %v769_v59 = vpop.xlane.xlu0 %768 }
 0x2c1   :  { %v771_v60 = vsub.f32 %v763_v55, %v769_v59  ;;  %1038 = vpow2.f32 %v772_v58 }
 0x2c3   :  { %v774_v61 = vmul.f32 1.442695, %v771_v60 }
 0x2c5   :  { %1040 = vpow2.f32 %v774_v61 }
 0x2cb   :  { %v1039_v62 = vpop.eup %1038 }
 0x2cc   :  { %776 = vadd.xlane.f32.xlu1 %v1039_v62 }
 0x2cf   :  { %v1041_v63 = vpop.eup %1040 }
 0x2d0   :  { %778 = vadd.xlane.f32.xlu1 %v1041_v63 }
 0x359   :  { %v777_v0 = vpop.xlane.xlu1 %776 }
 0x35a   :  { %1042 = vlog2.f32 %v777_v0 }
 0x35d   :  { %v779_v1 = vpop.xlane.xlu1 %778 }
 0x35e   :  { %1044 = vlog2.f32 %v779_v1 }
 0x364   :  { %v1043_v2 = vpop.eup %1042 }
 0x365   :  { %v781_v3 = vmul.f32 0.6931472, %v1043_v2 }
 0x367   :  { %v784_v4 = vsub.f32 %v770_v57, %v781_v3 }
 0x368   :  { %v1045_v5 = vpop.eup %1044 }
 0x369   :  { %786 = vst.msk [vmem:[#allocation8] sm:$0xff] %vm484_vm1, %v784_v4  ;;  %v783_v6 = vmul.f32 0.6931472, %v1045_v5 }
 0x36b   :  { %v785_v7 = vsub.f32 %v771_v60, %v783_v6 }
 0x36d   :  { %787 = vst.msk [vmem:[#allocation8 + $0x8] sm:$0xff] %vm484_vm1, %v785_v7 }
 0x36e   :  { %1123 = shalt.err (!%p1120_p0)
}
 0x36f   :  { %s1124_s12 = scalar_lea.hbm %s1263_s5, 256 }
 0x370   :  { %p1125_p1 = scmp.ne.s32.totalorder %s1263_s5, %s1124_s12  ;;  %p1128_p2 = scmp.lt.u32.totalorder %s1124_s12, %s1263_s5 }
 0x372   :  { %p1130_p3 = pnand %p1128_p2, %p1125_p1 }
 0x374   :  { %1133 = shalt.err (!%p1130_p3)
}
 0x375   :  { %s1150_s1 = smov 128   ;;  %s1151_s17 = smov 8  }
 0x376   :  { %799 = dma.vmem_to_hbm [thread:$0]  %s794_s8, 256, %s1263_s5, [#allocation4], %s1150_s1, %s1150_s1, %s1151_s17  }
 0x377   :  { %1138 = dma.done.wait [#allocation4], 256  }
 0x378   :  { %1139 = vsyncadd [#allocation4], 4294967040 }
 0x379   :  { %803 = vsyncpa [#allocation3], 1 }
 0x37a   :  { %804 = vsyncpa [#allocation6], 1 }
 0x37b   :  { %805 = vsyncpa [#allocation4], 1 }

</bundles_post_ra>
